<compile_context>
chip_gen: v6e
topology: v6e:2x2x1
jax: 0.10.0
libtpu: 0.0.40
codegen_flags: <defaults>
</compile_context>

<pallas_src>
import functools
import math

import jax
import jax.numpy as jnp
from jax.experimental import pallas as pl
from jax.experimental.pallas import tpu as pltpu


def mlp_kernel(x_ref, w1_ref, w2_ref, w3_ref, b1_ref, b2_ref, b3_ref, o_ref,
               *, bf16_elementwise):
    ew = jnp.bfloat16 if bf16_elementwise else jnp.float32

    x = x_ref[...]                                  # (8, TB)  bf16, batch on lanes
    w1 = w1_ref[...]                                # (16, 8)  bf16
    w2 = w2_ref[...]                                # (16, 16) bf16
    w3 = w3_ref[...]                                # (16, 1)  f32
    b1 = b1_ref[...].astype(ew)                     # (16, 1)
    b2 = b2_ref[...].astype(ew)                     # (16, 1)
    b3 = b3_ref[...]                                # (1, 1)   f32

    # Layer 1 (MXU): (16,8) @ (8,TB) -> (16,TB), f32 accumulation.
    h = jnp.dot(w1, x, preferred_element_type=jnp.float32)
    h = jnp.maximum(h.astype(ew) + b1, 0).astype(jnp.bfloat16)

    # Layer 2 (MXU): (16,16) @ (16,TB) -> (16,TB).
    h = jnp.dot(w2, h, preferred_element_type=jnp.float32)
    h = jnp.maximum(h.astype(ew) + b2, 0).astype(jnp.float32)

    # Layer 3: (16,1)*(16,TB) -> sublane-sum -> (1,TB); bias + ReLU in f32.
    # TODO(synk): on v7x, if a bundle dump shows VALU saturating, move this
    # back onto the MXU as (1,16)@(16,TB) (MRB makes the tiny matmul cheap).
    y = jnp.sum(w3 * h, axis=0, keepdims=True) + b3
    o_ref[...] = jnp.maximum(y, 0.0).astype(o_ref.dtype)


def _round_up(v, m):
    return ((v + m - 1) // m) * m


def _choose_tile_b(batch, max_tile=16384, target_steps=4):
    """Multiple-of-128 lane tile; large batches keep >= target_steps grid steps."""
    max_tile = max(128, _round_up(max_tile, 128))
    full = _round_up(max(batch, 1), 128)
    if full <= max_tile * target_steps:
        tile = _round_up(-(-full // target_steps), 128)
    else:
        tile = max_tile
    return max(128, min(tile, full))


def _bf16_vpu_available():
    """v5e's VPU has no bf16; newer chips do.  Perf heuristic only (both paths
    are numerically valid)."""
    try:
        kind = jax.devices()[0].device_kind.lower()
    except Exception:
        return True
    return not ("v5 lite" in kind or "v5e" in kind or "v5lite" in kind)


def linear_model_forward(x, params, *, tile_b=None, bf16_elementwise=None,
                         x_is_col_major=False):
    """Forward pass of LinearModel.

    x: (B, 8) float by default, or (8, B) (ideally already bf16) when
       x_is_col_major=True (skips the wrapper transpose/cast pass).
    params: PyTorch-layout (out_features, in_features) weights w1..w3, b1..b3.
    Returns (B, 1) float32.
    """
    if x_is_col_major:
        d_in, B = x.shape
    else:
        B, d_in = x.shape
    assert d_in == 8, d_in

    if bf16_elementwise is None:
        bf16_elementwise = _bf16_vpu_available()

    w1 = params["w1"].astype(jnp.bfloat16)                 # (16, 8)
    w2 = params["w2"].astype(jnp.bfloat16)                 # (16, 16)
    w3t = params["w3"].astype(jnp.float32).T               # (16, 1)
    b1 = params["b1"].astype(jnp.float32).reshape(16, 1)
    b2 = params["b2"].astype(jnp.float32).reshape(16, 1)
    b3 = params["b3"].astype(jnp.float32).reshape(1, 1)

    TB = _choose_tile_b(B) if tile_b is None else max(128, _round_up(tile_b, 128))
    grid = (pl.cdiv(B, TB),)
    Bp = grid[0] * TB

    # Layout plumbing only.  Fast path: deliver x as (8, B) bf16 upstream.
    x_t = x if x_is_col_major else x.T
    x_t = x_t.astype(jnp.bfloat16)
    if Bp != B:                                    # pad only the ragged tail
        x_t = jnp.pad(x_t, ((0, 0), (0, Bp - B)))

    kernel = functools.partial(mlp_kernel, bf16_elementwise=bf16_elementwise)
    const = lambda i: (0, 0)

    out = pl.pallas_call(
        kernel,
        out_shape=jax.ShapeDtypeStruct((1, Bp), jnp.float32),
        grid_spec=pltpu.PrefetchScalarGridSpec(
            num_scalar_prefetch=0,
            grid=grid,
            in_specs=[
                pl.BlockSpec((8, TB), lambda i: (0, i)),   # x tile (lane-dense)
                pl.BlockSpec(w1.shape, const),             # constant params:
                pl.BlockSpec(w2.shape, const),             #   DMA'd once,
                pl.BlockSpec(w3t.shape, const),            #   no in-kernel
                pl.BlockSpec(b1.shape, const),             #   lane slicing
                pl.BlockSpec(b2.shape, const),
                pl.BlockSpec(b3.shape, const),
            ],
            out_specs=pl.BlockSpec((1, TB), lambda i: (0, i)),
        ),
        compiler_params=pltpu.CompilerParams(
            dimension_semantics=("parallel",),
            vmem_limit_bytes=32 * 1024 * 1024,   # safe on v7x's 64 MiB VMEM too
        ),
    )(x_t, w1, w2, w3t, b1, b2, b3)

    return out[:, :B].T                          # (B, 1); trim pad, row-major


def init_params(key):
    """Mirrors PyTorch nn.Linear default init, weights in (out, in) layout."""
    sizes = [(16, 8), (16, 16), (1, 16)]
    params = {}
    keys = jax.random.split(key, 2 * len(sizes))
    for idx, (fan_out, fan_in) in enumerate(sizes):
        bound = 1.0 / math.sqrt(fan_in)
        params[f"w{idx + 1}"] = jax.random.uniform(
            keys[2 * idx], (fan_out, fan_in),
            minval=-bound, maxval=bound, dtype=jnp.float32)
        params[f"b{idx + 1}"] = jax.random.uniform(
            keys[2 * idx + 1], (fan_out,),
            minval=-bound, maxval=bound, dtype=jnp.float32)
    return params


def reference_forward_f32(x, params):
    h = x
    for i in (1, 2, 3):
        h = jnp.maximum(h @ params[f"w{i}"].T + params[f"b{i}"], 0.0)
    return h


def reference_forward_emulated(x, params, bf16_elementwise):
    """Matches the kernel numerics: bf16 MXU operands / f32 accumulation,
    bias+ReLU in bf16 (or f32), layer 3 in f32."""
    ew = jnp.bfloat16 if bf16_elementwise else jnp.float32
    w1 = params["w1"].astype(jnp.bfloat16)
    w2 = params["w2"].astype(jnp.bfloat16)
    w3 = params["w3"].astype(jnp.float32)
    h = jnp.dot(x.astype(jnp.bfloat16), w1.T, preferred_element_type=jnp.float32)
    h = jnp.maximum(h.astype(ew) + params["b1"].astype(ew), 0).astype(jnp.bfloat16)
    h = jnp.dot(h, w2.T, preferred_element_type=jnp.float32)
    h = jnp.maximum(h.astype(ew) + params["b2"].astype(ew), 0).astype(jnp.float32)
    y = h @ w3.T + params["b3"]
    return jnp.maximum(y, 0.0)


if __name__ == "__main__":
    key = jax.random.PRNGKey(0)
    pkey, xkey = jax.random.split(key)
    params = init_params(pkey)

    # Small batch, not a multiple of 128: exercises the ragged last tile and
    # (with the adaptive tile of 256) a 4-step pipelined "parallel" grid.
    B = 1000
    x = jax.random.normal(xkey, (B, 8), dtype=jnp.float32)

    use_bf16_ew = _bf16_vpu_available()
    out = jax.block_until_ready(
        linear_model_forward(x, params, bf16_elementwise=use_bf16_ew))
    assert out.shape == (B, 1), out.shape

    ref_emul = reference_forward_emulated(x, params, use_bf16_ew)
    ref_f32 = reference_forward_f32(x, params)
    err_emul = float(jnp.max(jnp.abs(out - ref_emul)))
    err_f32 = float(jnp.max(jnp.abs(out - ref_f32)))
    assert err_emul < 5e-3, f"mismatch vs numerics-matched reference: {err_emul}"
    assert err_f32 < 5e-2, f"mismatch vs f32 reference: {err_f32}"

    # Fast path: caller supplies x already as (8, B) bf16 (no wrapper
    # transpose/cast pass).  Must agree with the default path.
    out_cm = jax.block_until_ready(
        linear_model_forward(x.T.astype(jnp.bfloat16), params,
                             bf16_elementwise=use_bf16_ew, x_is_col_major=True))
    err_cm = float(jnp.max(jnp.abs(out_cm - out)))
    assert err_cm < 1e-6, f"col-major fast path mismatch: {err_cm}"

    print("KERNEL_OK")
</pallas_src>

<mosaic_0001>
module attributes {stable_mosaic.version = 11 : i64} {
  func.func @mlp_kernel(%arg0: i32, %arg1: memref<8x256xbf16, #tpu.memory_space<vmem>>, %arg2: memref<16x8xbf16, #tpu.memory_space<vmem>>, %arg3: memref<16x16xbf16, #tpu.memory_space<vmem>>, %arg4: memref<16x1xf32, #tpu.memory_space<vmem>>, %arg5: memref<16x1xf32, #tpu.memory_space<vmem>>, %arg6: memref<16x1xf32, #tpu.memory_space<vmem>>, %arg7: memref<1x1xf32, #tpu.memory_space<vmem>>, %arg8: memref<1x256xf32, #tpu.memory_space<vmem>>) attributes {dimension_semantics = [#tpu.dimension_semantics<parallel>], iteration_bounds = array<i64: 4>, scalar_prefetch = 0 : i64, scratch_operands = 0 : i64, tpu.core_type = #tpu.core_type<tc>, window_params = [{transform_indices = @transform_0, window_bounds = array<i64: 8, 256>}, {pipeline_mode = #tpu.pipeline_mode<synchronous>, transform_indices = @transform_1, window_bounds = array<i64: 16, 8>}, {pipeline_mode = #tpu.pipeline_mode<synchronous>, transform_indices = @transform_2, window_bounds = array<i64: 16, 16>}, {pipeline_mode = #tpu.pipeline_mode<synchronous>, transform_indices = @transform_3, window_bounds = array<i64: 16, 1>}, {pipeline_mode = #tpu.pipeline_mode<synchronous>, transform_indices = @transform_4, window_bounds = array<i64: 16, 1>}, {pipeline_mode = #tpu.pipeline_mode<synchronous>, transform_indices = @transform_5, window_bounds = array<i64: 16, 1>}, {pipeline_mode = #tpu.pipeline_mode<synchronous>, transform_indices = @transform_6, window_bounds = array<i64: 1, 1>}, {transform_indices = @transform_7, window_bounds = array<i64: 1, 256>}]} {
    %c0 = arith.constant 0 : index
    %c0_0 = arith.constant 0 : index
    %0 = vector.load %arg1[%c0, %c0_0] : memref<8x256xbf16, #tpu.memory_space<vmem>>, vector<8x256xbf16>
    %c0_1 = arith.constant 0 : index
    %c0_2 = arith.constant 0 : index
    %1 = vector.load %arg2[%c0_1, %c0_2] : memref<16x8xbf16, #tpu.memory_space<vmem>>, vector<16x8xbf16>
    %c0_3 = arith.constant 0 : index
    %c0_4 = arith.constant 0 : index
    %2 = vector.load %arg3[%c0_3, %c0_4] : memref<16x16xbf16, #tpu.memory_space<vmem>>, vector<16x16xbf16>
    %c0_5 = arith.constant 0 : index
    %c0_6 = arith.constant 0 : index
    %3 = vector.load %arg4[%c0_5, %c0_6] : memref<16x1xf32, #tpu.memory_space<vmem>>, vector<16x1xf32>
    %c0_7 = arith.constant 0 : index
    %c0_8 = arith.constant 0 : index
    %4 = vector.load %arg5[%c0_7, %c0_8] : memref<16x1xf32, #tpu.memory_space<vmem>>, vector<16x1xf32>
    %5 = arith.truncf %4 : vector<16x1xf32> to vector<16x1xbf16>
    %c0_9 = arith.constant 0 : index
    %c0_10 = arith.constant 0 : index
    %6 = vector.load %arg6[%c0_9, %c0_10] : memref<16x1xf32, #tpu.memory_space<vmem>>, vector<16x1xf32>
    %7 = arith.truncf %6 : vector<16x1xf32> to vector<16x1xbf16>
    %c0_11 = arith.constant 0 : index
    %c0_12 = arith.constant 0 : index
    %8 = vector.load %arg7[%c0_11, %c0_12] : memref<1x1xf32, #tpu.memory_space<vmem>>, vector<1x1xf32>
    %cst = arith.constant dense<0.000000e+00> : vector<16x256xf32>
    %9 = tpu.matmul %1, %0, %cst {dimension_numbers = #tpu.dot_dimension_numbers<[1], [0], [0], [1], [0, 0, 1, 1], [], []>} : vector<16x8xbf16>, vector<8x256xbf16>, vector<16x256xf32> -> vector<16x256xf32>
    %10 = arith.truncf %9 : vector<16x256xf32> to vector<16x256xbf16>
    %11 = vector.broadcast %5 : vector<16x1xbf16> to vector<16x256xbf16>
    %12 = arith.addf %10, %11 : vector<16x256xbf16>
    %cst_13 = arith.constant 0.000000e+00 : bf16
    %13 = vector.broadcast %cst_13 : bf16 to vector<16x256xbf16>
    %14 = arith.maximumf %12, %13 : vector<16x256xbf16>
    %cst_14 = arith.constant dense<0.000000e+00> : vector<16x256xf32>
    %15 = tpu.matmul %2, %14, %cst_14 {dimension_numbers = #tpu.dot_dimension_numbers<[1], [0], [0], [1], [0, 0, 1, 1], [], []>} : vector<16x16xbf16>, vector<16x256xbf16>, vector<16x256xf32> -> vector<16x256xf32>
    %16 = arith.truncf %15 : vector<16x256xf32> to vector<16x256xbf16>
    %17 = vector.broadcast %7 : vector<16x1xbf16> to vector<16x256xbf16>
    %18 = arith.addf %16, %17 : vector<16x256xbf16>
    %cst_15 = arith.constant 0.000000e+00 : bf16
    %19 = vector.broadcast %cst_15 : bf16 to vector<16x256xbf16>
    %20 = arith.maximumf %18, %19 : vector<16x256xbf16>
    %21 = arith.extf %20 : vector<16x256xbf16> to vector<16x256xf32>
    %22 = vector.broadcast %3 : vector<16x1xf32> to vector<16x256xf32>
    %23 = arith.mulf %22, %21 : vector<16x256xf32>
    %cst_16 = arith.constant dense<0.000000e+00> : vector<256xf32>
    %24 = vector.multi_reduction <add>, %23, %cst_16 [0] : vector<16x256xf32> to vector<256xf32>
    %25 = vector.shape_cast %24 : vector<256xf32> to vector<1x256xf32>
    %26 = vector.broadcast %8 : vector<1x1xf32> to vector<1x256xf32>
    %27 = arith.addf %25, %26 : vector<1x256xf32>
    %cst_17 = arith.constant 0.000000e+00 : f32
    %28 = vector.broadcast %cst_17 : f32 to vector<1x256xf32>
    %29 = arith.maximumf %27, %28 : vector<1x256xf32>
    %c0_18 = arith.constant 0 : index
    %c0_19 = arith.constant 0 : index
    %30 = vector.load %arg8[%c0_18, %c0_19] : memref<1x256xf32, #tpu.memory_space<vmem>>, vector<1x256xf32>
    tpu.vector_store %arg8[%c0_18, %c0_19], %29 {strides = array<i32>} : memref<1x256xf32, #tpu.memory_space<vmem>>, vector<1x256xf32>,
    return
  }
  func.func @transform_0(%arg0: i32) -> (i32, i32) {
    %c0_i32 = arith.constant 0 : i32
    %c0_i32_0 = arith.constant 0 : i32
    return %c0_i32, %arg0 : i32, i32
  }
  func.func @transform_1(%arg0: i32) -> (i32, i32) {
    %c0_i32 = arith.constant 0 : i32
    %c0_i32_0 = arith.constant 0 : i32
    %c0_i32_1 = arith.constant 0 : i32
    return %c0_i32, %c0_i32_0 : i32, i32
  }
  func.func @transform_2(%arg0: i32) -> (i32, i32) {
    %c0_i32 = arith.constant 0 : i32
    %c0_i32_0 = arith.constant 0 : i32
    %c0_i32_1 = arith.constant 0 : i32
    return %c0_i32, %c0_i32_0 : i32, i32
  }
  func.func @transform_3(%arg0: i32) -> (i32, i32) {
    %c0_i32 = arith.constant 0 : i32
    %c0_i32_0 = arith.constant 0 : i32
    %c0_i32_1 = arith.constant 0 : i32
    return %c0_i32, %c0_i32_0 : i32, i32
  }
  func.func @transform_4(%arg0: i32) -> (i32, i32) {
    %c0_i32 = arith.constant 0 : i32
    %c0_i32_0 = arith.constant 0 : i32
    %c0_i32_1 = arith.constant 0 : i32
    return %c0_i32, %c0_i32_0 : i32, i32
  }
  func.func @transform_5(%arg0: i32) -> (i32, i32) {
    %c0_i32 = arith.constant 0 : i32
    %c0_i32_0 = arith.constant 0 : i32
    %c0_i32_1 = arith.constant 0 : i32
    return %c0_i32, %c0_i32_0 : i32, i32
  }
  func.func @transform_6(%arg0: i32) -> (i32, i32) {
    %c0_i32 = arith.constant 0 : i32
    %c0_i32_0 = arith.constant 0 : i32
    %c0_i32_1 = arith.constant 0 : i32
    return %c0_i32, %c0_i32_0 : i32, i32
  }
  func.func @transform_7(%arg0: i32) -> (i32, i32) {
    %c0_i32 = arith.constant 0 : i32
    %c0_i32_0 = arith.constant 0 : i32
    return %c0_i32, %arg0 : i32, i32
  }
}

</mosaic_0001>

<bundles_post_ra>
// kernel: tpu_custom_call.1
= control target key start
LH: loop header
LB: loop body
LE: loop exit
PB: predicated region body
PF: predicated region fallthrough
CT: control target
= control target key end

     0   :  { %s862_s0 = inlined_call_operand.vmem [shape: bf16[8,1024], index: 0, kind: input, shape index: {}]   ;;  %s863_s1 = inlined_call_operand.vmem [shape: bf16[16,8], index: 1, kind: input, shape index: {}]   ;;  %s864_s2 = inlined_call_operand.vmem [shape: bf16[16,16], index: 2, kind: input, shape index: {}]   ;;  %s865_s3 = inlined_call_operand.vmem [shape: f32[16,1], index: 3, kind: input, shape index: {}]   ;;  %s866_s4 = inlined_call_operand.vmem [shape: f32[16,1], index: 4, kind: input, shape index: {}]   ;;  %s867_s5 = inlined_call_operand.vmem [shape: f32[16,1], index: 5, kind: input, shape index: {}]   ;;  %s868_s6 = inlined_call_operand.<no memory space> [shape: f32[1,1], index: 6, kind: input, shape index: {}]   ;;  %s869_s7 = inlined_call_operand.hbm [shape: f32[1,1024], index: 7, kind: output, shape index: {}]  }
   0x1   :  { %v12_v0 = vstv %s868_s6 }
   0x2   :  { %13 = vst [vmem:[#allocation2] sm:$0x1] %v12_v0 }
   0x3   :  { %14 = vsyncpa [#allocation4], 0 }
   0x4   :  { %16 = vsyncpa [#allocation4 + $0x1], 0  ;;  %s752_s26 = smov 0   ;;  %s754_s27 = smov 0  }
   0x5   :  { %s756_s28 = smov 0   ;;  %s758_s29 = smov 0  }
   0x6 LB: > { %s773_s6 = sadd.s32 4294967295, %s704_s29   ;;  %s577_s30 = sadd.s32 4294967294, %s704_s29   ;;  %s704_s29 = sphi %s758_s29, %s875_s29   ;;  %s700_s28 = sphi %s756_s28, %s874_s28   ;;  %s696_s27 = sphi %s754_s27, %s873_s27   ;;  %s692_s26 = sphi %s752_s26, %s872_s26  }
   0x7   : > { %s777_s8 = sadd.s32 1, %s704_s29   ;;  %s181_s9 = sadd.s32 1, %s700_s28 }
   0x8   : > { %s178_s10 = ssub.s32 %s704_s29, %s777_s8  ;;  %p191_p0 = scmp.ne.s32.totalorder %s700_s28, %s696_s27 }
   0x9   : > { %p179_p1 = scmp.eq.s32.totalorder %s178_s10, 0  ;;  %p192_p2 = scmp.eq.s32.totalorder %s773_s6, 3 }
   0xa   : > { %p197_p3 = scmp.ne.s32.totalorder %s696_s27, %s692_s26  ;;  %p198_p4 = scmp.eq.s32.totalorder %s577_s30, 3 }
   0xb   : > { %s788_s11 = scalar_select %p179_p1, %s700_s28, %s181_s9  }
   0xc   : > { %p790_p5 = por %p192_p2, %p191_p0  ;;  %p794_p6 = por %p198_p4, %p197_p3 }
   0xd   : > { %p580_p7 = scmp.ge.s32.totalorder %s704_s29, 1  ;;  %p243_p8 = scmp.lt.s32.totalorder %s704_s29, 5 }
   0xf   : > { %p244_p9 = pnand %p580_p7, %p243_p8 }
  0x10   : > { %s582_s14 = sshll.u32 (!%p244_p9), %s773_s6, 1  ;;  %s272_s20 = sand.u32 (!%p244_p9), 1, %s696_s27  }
  0x11   : > { %247 = sbr.rel (%p244_p9) target bundleno = 487 (0x1e7), region = 48  ;;  %p276_p10 = scmp.lt.s32.totalorder (!%p244_p9), %s582_s14, 7 }
  0x12   : > { %s581_s21 = sshll.u32 (!%p244_p9), %s272_s20, 1  ;;  %s596_s22 = sshll.u32 (!%p244_p9), %s773_s6, 5 }
  0x13   : > { %s516_s9 = scalar_lea.hbm (!%p244_p9), %s869_s7, %s596_s22  ;;  %s504_s10 = scalar_lea.sflag (!%p244_p9), [#allocation4], %s272_s20 }
  0x14   : > { %s708_s15 = smov (!%p244_p9), [#allocation3]  }
  0x15   : > { %s648_s16 = sshll.u32 (!%p244_p9), %s708_s15, 4  ;;  %s649_s16 = int_to_ptr.vmem [resolvable:$false] %s648_s16 }
  0x16   : > { %v706_v1 = vmov 0   ;;  %v290_v2 = vld [vmem:[%s866_s4] sm:$0xff]  ;;  %v291_v3 = vld [vmem:[%s866_s4 + $0x8] sm:$0xff]  ;;  %s877_s14 = smov (!%p276_p10, %s582_s14), 7  ;;  %vm311_vm0 = vcmask 1043456   ;;  %vm307_vm1 = vcmask 64512   ;;  %v472_v47 = vlaneseq }
  0x17   : > { %350 = vmatprep.mubr.bf16.mxu0 %v706_v1  ;;  %638 = vset.pattern.permute.xlu0 %v706_v1  ;;  %v292_v4 = vpack.c.bf16 %v291_v3, %v290_v2  ;;  %v293_v5 = vld [vmem:[%s867_s5] sm:$0xff]  ;;  %v294_v6 = vld [vmem:[%s867_s5 + $0x8] sm:$0xff]  ;;  %s583_s23 = sshll.u32 %s877_s14, 2  ;;  %vm377_vm2 = vcmask 130048   ;;  %v707_v62 = vmov 1966171168  }
  0x18   : > { %413 = vmatprep.mubr.bf16.mxu1 %v706_v1  ;;  %639 = vset.pattern.permute.xlu1 %v706_v1  ;;  %v295_v7 = vpack.c.bf16 %v294_v6, %v293_v5  ;;  %s279_s30 = scalar_lea.vmem %s862_s0, %s583_s23  ;;  %v296_v11 = vld [vmem:[#allocation2] sm:$0x1]  ;;  %v289_v15 = vld [vmem:[%s865_s3 + $0x8] sm:$0xff]  ;;  %v473_v53 = vshrl.u32 %v472_v47, 7  ;;  %v484_v63 = vunpack.c.l.s4 %v707_v62  ;;  %s274_s23 = scalar_lea.vmem [#allocation3], %s581_s21  ;;  %vm500_vm3 = vcmp.lt.s32.totalorder %v472_v47, 256 }
  0x19   : > { %365 = vperm.xlu0 %638, %v292_v4   ;;  %v283_v8 = vld [vmem:[%s279_s30] sm:$0xff]  ;;  %s518_s24 = sshll.u32 %s274_s23, 4  ;;  %s650_s6 = scalar_lea.vmem %s649_s16, 64  ;;  %s519_s24 = int_to_ptr.vmem [resolvable:$true] %s518_s24 }
  0x1a   : > { %v586_v9 = vcombine.high %v283_v8, %v283_v8  ;;  %v585_v10 = vcombine.low %v283_v8, %v283_v8  ;;  %v642_v13 = vld [vmem:[%s863_s1] sm:$0xff]   ;;  %v474_v58 = vsub.s32 0, %v473_v53  ;;  %v485_v5 = vunpack.c.0.s8 %v484_v63  ;;  %s644_s14 = scalar_lea.vmem %s519_s24, 32  ;;  %p651_p0 = scmp.lt.s32.totalorder %s519_s24, %s649_s16 }
  0x1b   : > { %v288_v14 = vld [vmem:[%s865_s3] sm:$0xff]  ;;  %p645_p11 = scmp.ne.s32.totalorder %s519_s24, %s644_s14  ;;  %p652_p1 = scmp.lt.s32.totalorder %s650_s6, %s644_s14 }
  0x1c   : > { %587 = vmatprep.subr.msk.bf16.mxu0 %vm311_vm0, %v586_v9  ;;  %v313_v12 = vsel %vm311_vm0, %v585_v10, 0  ;;  %441 = vperm.xlu1 %639, %v288_v14   ;;  %v643_v27 = vld [vmem:[%s864_s2] sm:$0xff]   ;;  %v488_v9 = vsub.s32 %v485_v5, %v473_v53 }
  0x1d   : > { %428 = vperm.xlu0 %638, %v295_v7   ;;  %333 = vmatpush1.bf16.msra.mxu0 %v313_v12  ;;  %p646_p12 = pnand %p645_p11, %p790_p5  ;;  %p653_p2 = por %p652_p1, %p651_p0 }
  0x1f   : > { %p647_p13 = pneg %p646_p12 }
  0x20   : > { %588 = vmatmul.mubr.msk.bf16.vlgmr.msra.gmra.mxu0 %vm307_vm1, %v642_v13  ;;  %446 = vperm.xlu1 %639, %v289_v15  }
  0x21   : > { %469 = vperm.xlu0 %638, %v296_v11   ;;  %p654_p3 = pnand %p653_p2, %p647_p13 }
  0x94   : > { %v366_v21 = vpop.permute.xlu0 %365 }
  0x97   : > { %v442_v33 = vpop.permute.xlu1 %441 }
  0x98   : > { %v429_v31 = vpop.permute.xlu0 %428 }
  0x9b   : > { %v447_v42 = vpop.permute.xlu1 %446 }
  0x9c   : > { %v470_v61 = vpop.permute.xlu0 %469 }
  0x9d   : > { %v475_v2 = vrot.slane %v470_v61, %v474_v58 }
  0xe0   : > { %v352_v16 = vpop.f32.mrf.mxu0 }
  0xe2   : > { %v354_v17 = vpop.f32.mrf.mxu0 }
  0xe4   : > { %v356_v18 = vpop.f32.mrf.mxu0 }
  0xe5   : > { %v361_v19 = vpack.c.bf16 %v356_v18, %v352_v16 }
  0xe6   : > { %v358_v20 = vpop.f32.mrf.mxu0 }
  0xe7   : > { %v362_v22 = vpack.c.bf16 %v358_v20, %v354_v17  ;;  %v368_v23 = vadd.bf16 %v366_v21, %v361_v19 }
  0xe9   : > { %v369_v24 = vadd.bf16 %v366_v21, %v362_v22  ;;  %v370_v26 = vmax.bf16 %v706_v1, %v368_v23 }
  0xeb   : > { %v371_v25 = vmax.bf16 %v706_v1, %v369_v24 }
  0xed   : > { %395 = vmatprep.subr.bf16.mxu1 %v371_v25 }
  0xee   : > { %396 = vmatpush1.bf16.msra.mxu1 %v370_v26 }
  0xf1   : > { %590 = vmatmul.mubr.msk.bf16.vlgmr.msra.gmra.mxu1 %vm377_vm2, %v643_v27 }
 0x1b1   : > { %v415_v28 = vpop.f32.mrf.mxu1 }
 0x1b3   : > { %v417_v29 = vpop.f32.mrf.mxu1 }
 0x1b5   : > { %v419_v30 = vpop.f32.mrf.mxu1 }
 0x1b6   : > { %v424_v32 = vpack.c.bf16 %v419_v30, %v415_v28 }
 0x1b7   : > { %v421_v34 = vpop.f32.mrf.mxu1 }
 0x1b8   : > { %v431_v35 = vadd.bf16 %v429_v31, %v424_v32  ;;  %v425_v36 = vpack.c.bf16 %v421_v34, %v417_v29 }
 0x1ba   : > { %v433_v37 = vmax.bf16 %v706_v1, %v431_v35  ;;  %v432_v38 = vadd.bf16 %v429_v31, %v425_v36 }
 0x1bc   : > { %v435_v39 = vunpack.c.l.bf16 %v433_v37  ;;  %v434_v40 = vmax.bf16 %v706_v1, %v432_v38  ;;  %v437_v41 = vunpack.c.h.bf16 %v433_v37 }
 0x1be   : > { %v449_v43 = vmul.f32 %v442_v33, %v435_v39  ;;  %v436_v44 = vunpack.c.l.bf16 %v434_v40  ;;  %v438_v45 = vunpack.c.h.bf16 %v434_v40  ;;  %v451_v46 = vmul.f32 %v447_v42, %v437_v41 }
 0x1c0   : > { %v450_v48 = vmul.f32 %v442_v33, %v436_v44  ;;  %v452_v49 = vmul.f32 %v447_v42, %v438_v45  ;;  %v453_v50 = vadd.f32 %v451_v46, %v449_v43 }
 0x1c2   : > { %v454_v51 = vrot.slane %v453_v50, 4  ;;  %v460_v52 = vadd.f32 %v452_v49, %v450_v48 }
 0x1c4   : > { %v455_v54 = vadd.f32 %v454_v51, %v453_v50  ;;  %v461_v55 = vrot.slane %v460_v52, 4 }
 0x1c6   : > { %v456_v56 = vrot.slane %v455_v54, 2  ;;  %v462_v57 = vadd.f32 %v461_v55, %v460_v52 }
 0x1c8   : > { %v457_v59 = vadd.f32 %v456_v56, %v455_v54  ;;  %v463_v60 = vrot.slane %v462_v57, 2 }
 0x1ca   : > { %v458_v0 = vrot.slane %v457_v59, 1  ;;  %v464_v1 = vadd.f32 %v463_v60, %v462_v57 }
 0x1cc   : > { %v459_v3 = vadd.f32 %v458_v0, %v457_v59  ;;  %v465_v4 = vrot.slane %v464_v1, 1 }
 0x1ce   : > { %v466_v6 = vadd.f32 %v465_v4, %v464_v1  ;;  %v476_v7 = vadd.f32 %v475_v2, %v459_v3 }
 0x1d0   : > { %v477_v8 = vadd.f32 %v475_v2, %v466_v6  ;;  %v478_v10 = vmax.f32 %v476_v7, 0.0 }
 0x1d2   : > { %v479_v11 = vmax.f32 %v477_v8, 0.0 }
 0x1d4   : > { %v482_v12 = vcombine.low %v478_v10, %v479_v11 }
 0x1d6   : > { %v489_v13 = vrot.slane %v482_v12, %v488_v9 }
 0x1d8   : > { %v496_v14 = vrot.slane %v489_v13, %v488_v9 }
 0x1da   : > { %502 = vst.msk [vmem:[%s274_s23] sm:$0x3] %vm500_vm3, %v496_v14 }
 0x1db   : > { %657 = shalt.err (!%p654_p3)
}
 0x1dc   : > { %s658_s17 = scalar_lea.hbm %s516_s9, 32  ;;  %s662_s20 = scalar_lea.hbm %s869_s7, 128 }
 0x1dd   : > { %p659_p4 = scmp.ne.s32.totalorder %s516_s9, %s658_s17  ;;  %p663_p9 = scmp.lt.s32.totalorder %s516_s9, %s869_s7 }
 0x1de   : > { %p664_p10 = scmp.lt.s32.totalorder %s662_s20, %s658_s17 }
 0x1df   : > { %p660_p7 = pnand %p659_p4, %p790_p5 }
 0x1e0   : > { %p665_p11 = por %p664_p10, %p663_p9 }
 0x1e1   : > { %p661_p8 = pneg %p660_p7 }
 0x1e3   : > { %p666_p12 = pnand %p665_p11, %p661_p8 }
 0x1e5   : > { %669 = shalt.err (!%p666_p12)
}
 0x1e6   : > { %597 = dma.vmem_to_hbm [thread:$0]  (%p790_p5), %s519_s24, 32, %s516_s9, %s504_s10  }
 0x1e7 PF: > { %p603_p13 = scmp.ge.s32.totalorder %s704_s29, 2  ;;  %s530_s23 = sand.u32 1, %s692_s26  }
 0x1e8   : > { %s531_s25 = scalar_lea.sflag [#allocation4], %s530_s23 }
 0x1e9   : > { %p600_p0 = pnand %p603_p13, %p794_p6 }
 0x1eb   : > { %p601_p1 = pneg %p600_p0 }
 0x1ed   : > { %687 = dma.done.wait (%p601_p1), %s531_s25, 32  }
 0x1ee   : > { %689 = vsyncadd (%p601_p1), %s531_s25, 4294967264  ;;  %p19_p2 = scmp.ge.s32.totalorder %s777_s8, 6   ;;  %s872_s26 = smov %s696_s27 }
 0x1ef   : > { %s873_s27 = smov %s700_s28  ;;  %s874_s28 = smov %s788_s11 }
 0x1f0   : > { %s875_s29 = smov %s777_s8  ;;  %21 = sbr.rel (!%p19_p2) target bundleno = 6 (0x6), region = 83 }
 0x1f5   :  { %536 = vsyncpa [#allocation4], 1 }
 0x1f6   :  { %538 = vsyncpa [#allocation4 + $0x1], 1 }

</bundles_post_ra>
